<compile_context>
chip_gen: v5e
topology: v5e:2x2
jax: 0.10.0
libtpu: 0.0.40
codegen_flags: <defaults>
</compile_context>

<pallas_src>
import math

import jax
import jax.numpy as jnp
from jax.experimental import pallas as pl
from jax.experimental.pallas import tpu as pltpu

_LANES = 1024        # lane-dense width (multiple of 128)
_MAX_ROW_BLOCK = 512 # 512 x 1024 f32 = 2 MiB per tile


def _make_qi_kernel(maximize: bool):
    """Returns the Pallas kernel body for the given (static) maximize flag."""

    def qi_kernel(best_f_ref, x_ref, out_ref):
        # best_f arrives via scalar prefetch: a (1,) SMEM array.
        best_f = best_f_ref[0]
        x = x_ref[...]
        if maximize:
            diff = x - best_f
        else:
            diff = best_f - x
        out_ref[...] = jnp.maximum(diff, 0.0)

    return qi_kernel


def quantitative_improvement(samples: jax.Array,
                             best_f,
                             maximize: bool = True) -> jax.Array:
    """Pallas TPU implementation of QuantitativeImprovement.forward.

    samples: `num_samples x ...` float tensor of posterior samples.
    best_f : scalar 'best observed value' (python float or 0-d array).
    """
    orig_shape = samples.shape
    dtype = samples.dtype
    total = math.prod(orig_shape)

    # Flatten to a lane-dense 2D slab (rows, _LANES), padding as needed
    # (padding is harmless for an elementwise op; we slice it off afterwards).
    rows = pl.cdiv(total, _LANES)
    row_block = min(_MAX_ROW_BLOCK, max(8, ((rows + 7) // 8) * 8))
    rows_padded = ((rows + row_block - 1) // row_block) * row_block
    padded_total = rows_padded * _LANES

    flat = samples.reshape(-1)
    if padded_total != total:
        flat = jnp.pad(flat, (0, padded_total - total))
    x2d = flat.reshape(rows_padded, _LANES)

    best_f_arr = jnp.asarray(best_f, dtype=dtype).reshape(1)

    kernel = _make_qi_kernel(maximize)
    grid = (rows_padded // row_block,)

    out2d = pl.pallas_call(
        kernel,
        out_shape=jax.ShapeDtypeStruct((rows_padded, _LANES), dtype),
        grid_spec=pltpu.PrefetchScalarGridSpec(
            num_scalar_prefetch=1,
            grid=grid,
            # index_maps receive the scalar-prefetch ref as a trailing arg.
            in_specs=[
                pl.BlockSpec((row_block, _LANES), lambda i, bf: (i, 0)),
            ],
            out_specs=pl.BlockSpec((row_block, _LANES), lambda i, bf: (i, 0)),
        ),
        compiler_params=pltpu.CompilerParams(
            dimension_semantics=("parallel",)),
    )(best_f_arr, x2d)

    return out2d.reshape(-1)[:total].reshape(orig_shape)


def _reference(samples, best_f, maximize=True):
    if maximize:
        return jnp.maximum(samples - best_f, 0.0)
    return jnp.maximum(best_f - samples, 0.0)


if __name__ == "__main__":
    key = jax.random.PRNGKey(0)
    # num_samples x N x D posterior samples (small, deterministic)
    num_samples, n, d = 8, 16, 128
    samples = jax.random.normal(key, (num_samples, n, d), dtype=jnp.float32)
    best_f = 0.25  # deterministic "best observed value"

    # maximize branch
    out_max = quantitative_improvement(samples, best_f, maximize=True)
    out_max = jax.block_until_ready(out_max)
    ref_max = _reference(samples, best_f, maximize=True)
    assert out_max.shape == samples.shape
    assert jnp.allclose(out_max, ref_max, atol=1e-6), "maximize branch mismatch"

    # minimize branch
    out_min = quantitative_improvement(samples, best_f, maximize=False)
    out_min = jax.block_until_ready(out_min)
    ref_min = _reference(samples, best_f, maximize=False)
    assert out_min.shape == samples.shape
    assert jnp.allclose(out_min, ref_min, atol=1e-6), "minimize branch mismatch"

    # a non-aligned shape to exercise the flatten/pad path
    samples2 = jax.random.normal(jax.random.PRNGKey(1), (3, 7, 50), dtype=jnp.float32)
    out2 = jax.block_until_ready(
        quantitative_improvement(samples2, best_f, maximize=True))
    assert jnp.allclose(out2, _reference(samples2, best_f, True), atol=1e-6)

    print("KERNEL_OK")
</pallas_src>

<mosaic_0001>
module attributes {stable_mosaic.version = 11 : i64} {
  func.func @qi_kernel(%arg0: i32, %arg1: memref<1xf32, #tpu.memory_space<smem>>, %arg2: memref<16x1024xf32, #tpu.memory_space<vmem>>, %arg3: memref<16x1024xf32, #tpu.memory_space<vmem>>) attributes {dimension_semantics = [#tpu.dimension_semantics<parallel>], iteration_bounds = array<i64: 1>, scalar_prefetch = 1 : i64, scratch_operands = 0 : i64, tpu.core_type = #tpu.core_type<tc>, window_params = [{transform_indices = @transform_0, window_bounds = array<i64: 16, 1024>}, {transform_indices = @transform_1, window_bounds = array<i64: 16, 1024>}]} {
    %c0 = arith.constant 0 : index
    %0 = memref.load %arg1[%c0] : memref<1xf32, #tpu.memory_space<smem>>
    %c0_0 = arith.constant 0 : index
    %c0_1 = arith.constant 0 : index
    %1 = vector.load %arg2[%c0_0, %c0_1] : memref<16x1024xf32, #tpu.memory_space<vmem>>, vector<16x1024xf32>
    %2 = vector.broadcast %0 : f32 to vector<16x1024xf32>
    %3 = arith.subf %1, %2 : vector<16x1024xf32>
    %cst = arith.constant 0.000000e+00 : f32
    %4 = vector.broadcast %cst : f32 to vector<16x1024xf32>
    %5 = arith.maximumf %3, %4 : vector<16x1024xf32>
    %c0_2 = arith.constant 0 : index
    %c0_3 = arith.constant 0 : index
    %6 = vector.load %arg3[%c0_2, %c0_3] : memref<16x1024xf32, #tpu.memory_space<vmem>>, vector<16x1024xf32>
    tpu.vector_store %arg3[%c0_2, %c0_3], %5 {strides = array<i32>} : memref<16x1024xf32, #tpu.memory_space<vmem>>, vector<16x1024xf32>,
    return
  }
  func.func @transform_0(%arg0: i32, %arg1: memref<1xf32, #tpu.memory_space<smem>>) -> (i32, i32) {
    %c0_i32 = arith.constant 0 : i32
    %c0_i32_0 = arith.constant 0 : i32
    return %arg0, %c0_i32 : i32, i32
  }
  func.func @transform_1(%arg0: i32, %arg1: memref<1xf32, #tpu.memory_space<smem>>) -> (i32, i32) {
    %c0_i32 = arith.constant 0 : i32
    %c0_i32_0 = arith.constant 0 : i32
    return %arg0, %c0_i32 : i32, i32
  }
}

</mosaic_0001>

<bundles_post_ra>
// kernel: tpu_custom_call.1
= control target key start
LH: loop header
LB: loop body
LE: loop exit
PB: predicated region body
PF: predicated region fallthrough
CT: control target
= control target key end

     0   :  { %8 = vsyncpa [#allocation5], 0  ;;  %s220_s0 = inlined_call_operand.<no memory space> [shape: f32[1], index: 0, kind: input, shape index: {}]   ;;  %s221_s1 = inlined_call_operand.hbm [shape: f32[16,1024], index: 1, kind: input, shape index: {}]   ;;  %s222_s2 = inlined_call_operand.hbm [shape: f32[16,1024], index: 2, kind: output, shape index: {}]  }
   0x1   :  { %9 = vsyncpa [#allocation6], 0  ;;  %s14_s11 = sshll.u32 %s221_s1, 4  ;;  %s168_s12 = smov [#allocation4]   ;;  %s15_s11 = int_to_ptr.hbm [resolvable:$true] %s14_s11 }
   0x2   :  { %s16_s13 = sshll.u32 %s168_s12, 4  ;;  %s169_s14 = smov 1024   ;;  %s17_s13 = int_to_ptr.vmem [resolvable:$true] %s16_s13 }
   0x3   :  { %s170_s15 = smov 64  }
   0x4   :  { %22 = dma.hbm_to_vmem [thread:$0]  %s15_s11, 2048, %s17_s13, [#allocation5], %s169_s14, %s169_s14, %s170_s15  }
   0x5   :  { %164 = dma.done.wait [#allocation5], 2048  }
   0x6   :  { %165 = vsyncadd [#allocation5], 4294965248  ;;  %v196_v0 = vstv %s220_s0  ;;  %v28_v1 = vld [vmem:[#allocation4] sm:$0xff]  ;;  %v29_v2 = vld [vmem:[#allocation4 + $0x8] sm:$0xff]  ;;  %s171_s0 = smov [#allocation7]   ;;  %s99_s20 = sshll.u32 %s222_s2, 4  ;;  %s100_s20 = int_to_ptr.hbm [resolvable:$true] %s99_s20 }
   0x7   :  { %v30_v3 = vld [vmem:[#allocation4 + $0x10] sm:$0xff]  ;;  %v45_v4 = vsub.f32 %v28_v1, %v196_v0  ;;  %v46_v5 = vsub.f32 %v29_v2, %v196_v0  ;;  %v31_v7 = vld [vmem:[#allocation4 + $0x18] sm:$0xff]  ;;  %v32_v8 = vld [vmem:[#allocation4 + $0x20] sm:$0xff]  ;;  %s97_s1 = sshll.u32 %s171_s0, 4  ;;  %s98_s1 = int_to_ptr.vmem [resolvable:$true] %s97_s1 }
   0x8   :  { %v47_v6 = vsub.f32 %v30_v3, %v196_v0  ;;  %v33_v9 = vld [vmem:[#allocation4 + $0x28] sm:$0xff]  ;;  %v48_v10 = vsub.f32 %v31_v7, %v196_v0  ;;  %v49_v11 = vsub.f32 %v32_v8, %v196_v0  ;;  %v34_v13 = vld [vmem:[#allocation4 + $0x30] sm:$0xff]  ;;  %v35_v14 = vld [vmem:[#allocation4 + $0x38] sm:$0xff] }
   0x9   :  { %v50_v12 = vsub.f32 %v33_v9, %v196_v0  ;;  %v36_v15 = vld [vmem:[#allocation4 + $0x40] sm:$0xff]  ;;  %v61_v16 = vmax.f32 %v45_v4, 0.0  ;;  %v62_v17 = vmax.f32 %v46_v5, 0.0  ;;  %v51_v19 = vsub.f32 %v34_v13, %v196_v0  ;;  %v37_v20 = vld [vmem:[#allocation4 + $0x48] sm:$0xff]  ;;  %v38_v23 = vld [vmem:[#allocation4 + $0x50] sm:$0xff] }
   0xa   :  { %v63_v18 = vmax.f32 %v47_v6, 0.0  ;;  %v64_v21 = vmax.f32 %v48_v10, 0.0  ;;  %v52_v22 = vsub.f32 %v35_v14, %v196_v0  ;;  %v65_v24 = vmax.f32 %v49_v11, 0.0  ;;  %v39_v26 = vld [vmem:[#allocation4 + $0x58] sm:$0xff]  ;;  %v40_v29 = vld [vmem:[#allocation4 + $0x60] sm:$0xff]  ;;  %v41_v32 = vld [vmem:[#allocation4 + $0x68] sm:$0xff] }
   0xb   :  { %77 = vst [vmem:[#allocation7] sm:$0xff] %v61_v16  ;;  %v53_v25 = vsub.f32 %v36_v15, %v196_v0  ;;  %v66_v27 = vmax.f32 %v50_v12, 0.0  ;;  %v54_v28 = vsub.f32 %v37_v20, %v196_v0  ;;  %v67_v30 = vmax.f32 %v51_v19, 0.0  ;;  %v42_v35 = vld [vmem:[#allocation4 + $0x70] sm:$0xff]  ;;  %v43_v38 = vld [vmem:[#allocation4 + $0x78] sm:$0xff] }
   0xc   :  { %78 = vst [vmem:[#allocation7 + $0x8] sm:$0xff] %v62_v17  ;;  %v55_v31 = vsub.f32 %v38_v23, %v196_v0  ;;  %v68_v33 = vmax.f32 %v52_v22, 0.0  ;;  %v56_v34 = vsub.f32 %v39_v26, %v196_v0  ;;  %v57_v37 = vsub.f32 %v40_v29, %v196_v0 }
   0xd   :  { %79 = vst [vmem:[#allocation7 + $0x10] sm:$0xff] %v63_v18  ;;  %v69_v36 = vmax.f32 %v53_v25, 0.0  ;;  %v70_v39 = vmax.f32 %v54_v28, 0.0  ;;  %v58_v40 = vsub.f32 %v41_v32, %v196_v0  ;;  %v59_v42 = vsub.f32 %v42_v35, %v196_v0 }
   0xe   :  { %80 = vst [vmem:[#allocation7 + $0x18] sm:$0xff] %v64_v21  ;;  %v71_v41 = vmax.f32 %v55_v31, 0.0  ;;  %v72_v43 = vmax.f32 %v56_v34, 0.0  ;;  %v60_v44 = vsub.f32 %v43_v38, %v196_v0  ;;  %v73_v45 = vmax.f32 %v57_v37, 0.0 }
   0xf   :  { %81 = vst [vmem:[#allocation7 + $0x20] sm:$0xff] %v65_v24  ;;  %v74_v46 = vmax.f32 %v58_v40, 0.0  ;;  %v75_v47 = vmax.f32 %v59_v42, 0.0 }
  0x10   :  { %82 = vst [vmem:[#allocation7 + $0x28] sm:$0xff] %v66_v27  ;;  %v76_v48 = vmax.f32 %v60_v44, 0.0 }
  0x11   :  { %83 = vst [vmem:[#allocation7 + $0x30] sm:$0xff] %v67_v30 }
  0x12   :  { %84 = vst [vmem:[#allocation7 + $0x38] sm:$0xff] %v68_v33 }
  0x13   :  { %85 = vst [vmem:[#allocation7 + $0x40] sm:$0xff] %v69_v36 }
  0x14   :  { %86 = vst [vmem:[#allocation7 + $0x48] sm:$0xff] %v70_v39 }
  0x15   :  { %87 = vst [vmem:[#allocation7 + $0x50] sm:$0xff] %v71_v41 }
  0x16   :  { %88 = vst [vmem:[#allocation7 + $0x58] sm:$0xff] %v72_v43 }
  0x17   :  { %89 = vst [vmem:[#allocation7 + $0x60] sm:$0xff] %v73_v45 }
  0x18   :  { %90 = vst [vmem:[#allocation7 + $0x68] sm:$0xff] %v74_v46 }
  0x19   :  { %91 = vst [vmem:[#allocation7 + $0x70] sm:$0xff] %v75_v47 }
  0x1a   :  { %92 = vst [vmem:[#allocation7 + $0x78] sm:$0xff] %v76_v48 }
  0x1b   :  { %105 = dma.vmem_to_hbm [thread:$0]  %s98_s1, 2048, %s100_s20, [#allocation6], %s169_s14, %s169_s14, %s170_s15  }
  0x1c   :  { %166 = dma.done.wait [#allocation6], 2048  }
  0x1d   :  { %167 = vsyncadd [#allocation6], 4294965248 }
  0x1e   :  { %110 = vsyncpa [#allocation5], 1 }
  0x1f   :  { %111 = vsyncpa [#allocation6], 1 }

</bundles_post_ra>
